<compile_context>
chip_gen: v7x
topology: tpu7x:2x2x1
jax: 0.10.0
libtpu: 0.0.40
codegen_flags: <defaults>
</compile_context>

<pallas_src>
import math

import jax
import jax.numpy as jnp
from jax.experimental import pallas as pl
from jax.experimental.pallas import tpu as pltpu

_MIN_PALLAS_ELEMENTS = 1 << 20     # below this, plain jnp wins (launch overhead)
_MIN_GRID_STEPS = 8                # >= ~4 steps per v7x TensorCore
_MIN_TILE_BYTES = 1 << 20          # never shrink a tile below ~1 MiB for steps
_MAX_TILE_BYTES = 8 << 20          # cap per-tile budget at 8 MiB


def _alpha_blend_kernel(alpha_ref, xs_ref, xt_ref, o_ref):
    # alpha_ref: (1,) f32 scalar in SMEM (sigmoid already applied in the
    # wrapper when the merge strategy requires it).
    a32 = alpha_ref[0]
    xs = xs_ref[...]
    xt = xt_ref[...]
    out_dtype = o_ref.dtype
    # Match torch:  alpha.to(xs.dtype) * xs  +  (1 - alpha).to(xs.dtype) * xt
    a_s = a32.astype(xs.dtype)
    om_s = (1.0 - a32).astype(xs.dtype)
    t1 = (a_s * xs).astype(out_dtype)
    t2 = om_s.astype(out_dtype) * xt.astype(out_dtype)
    o_ref[...] = t1 + t2


def _vmem_capacity_bytes():
    try:
        return int(pltpu.get_tpu_info().vmem_capacity_bytes)
    except Exception:
        return 64 * 1024 * 1024            # conservative (v7x-sized) fallback


def _sublane_multiple(dtype):
    # f32 -> 8, bf16/f16 -> 16, int8/fp8 -> 32  (packed rows per sublane tile)
    return max(8, 32 // jnp.dtype(dtype).itemsize)


def _choose_lane_width(total):
    # Largest multiple of 128 that divides the flattened size.
    for lw in (4096, 2048, 1024, 512, 256, 128):
        if total % lw == 0:
            return lw
    return None


def _choose_row_tile(rows, lane_w, itemsize, sub, tile_budget_bytes):
    if rows <= sub:
        return rows                                    # full dim: always legal
    row_bytes = lane_w * itemsize
    # Budget-sized tile, rounded down to the sublane-packing multiple.
    tr = max(sub, (tile_budget_bytes // row_bytes) // sub * sub)
    tr = min(tr, (rows // sub) * sub)
    # Keep enough grid steps for pipelining on both v7x cores, unless that
    # would push the tile under ~1 MiB.
    if pl.cdiv(rows, tr) < _MIN_GRID_STEPS:
        floor_rows = max(sub, -(-_MIN_TILE_BYTES // row_bytes))
        floor_rows = -(-floor_rows // sub) * sub
        shrunk = max(sub, (rows // _MIN_GRID_STEPS) // sub * sub)
        if shrunk >= floor_rows:
            tr = min(tr, shrunk)
    return tr


def alpha_blender_forward(mix_factor, x_spatial, x_temporal,
                          merge_strategy="learned",
                          rearrange_pattern="b t -> (b t) 1 1",
                          min_pallas_elements=_MIN_PALLAS_ELEMENTS):
    """Pallas implementation of AlphaBlender.forward.

    mix_factor: shape (1,) float32 (buffer or parameter).
    x_spatial, x_temporal: identical shapes (any rank).  Output dtype follows
    torch type promotion of the two blend terms.
    """
    assert merge_strategy in ("learned", "fixed", "learned_with_images")
    assert x_spatial.shape == x_temporal.shape
    # rearrange_pattern only reshapes the scalar alpha; broadcast no-op here.
    del rearrange_pattern

    out_dtype = jnp.promote_types(x_spatial.dtype, x_temporal.dtype)
    alpha = mix_factor.astype(jnp.float32).reshape(1)
    if merge_strategy in ("learned", "learned_with_images"):
        alpha = jax.nn.sigmoid(alpha)

    shape = x_spatial.shape
    total = math.prod(shape)
    lane_w = _choose_lane_width(total)

    if lane_w is None or total < min_pallas_elements:
        # Tiny or awkwardly-sized tensor: plain fused XLA elementwise blend
        # (already near HBM roofline; custom-call overhead would dominate).
        a_s = alpha[0].astype(x_spatial.dtype)
        om_s = (1.0 - alpha[0]).astype(x_spatial.dtype)
        t1 = (a_s * x_spatial).astype(out_dtype)
        t2 = om_s.astype(out_dtype) * x_temporal.astype(out_dtype)
        return t1 + t2

    rows = total // lane_w
    itemsize = max(jnp.dtype(d).itemsize
                   for d in (x_spatial.dtype, x_temporal.dtype, out_dtype))
    sub = max(_sublane_multiple(d)
              for d in (x_spatial.dtype, x_temporal.dtype, out_dtype))

    # Generation-aware sizing: ~vmem_cap/12 per tile (capped at 8 MiB), and a
    # vmem limit covering 3 arrays x 2 pipeline buffers plus headroom.
    vmem_cap = _vmem_capacity_bytes()
    tile_budget = min(_MAX_TILE_BYTES, max(_MIN_TILE_BYTES, vmem_cap // 12))
    tr = _choose_row_tile(rows, lane_w, itemsize, sub, tile_budget)
    num_blocks = pl.cdiv(rows, tr)

    tile_bytes = tr * lane_w * itemsize
    vmem_limit = min(vmem_cap * 3 // 4, 6 * tile_bytes + (16 << 20))
    vmem_limit = max(vmem_limit, 16 << 20)

    xs2 = x_spatial.reshape(rows, lane_w)
    xt2 = x_temporal.reshape(rows, lane_w)     # no wrapper astype: cast in-kernel

    out2 = pl.pallas_call(
        _alpha_blend_kernel,
        out_shape=jax.ShapeDtypeStruct((rows, lane_w), out_dtype),
        grid_spec=pltpu.PrefetchScalarGridSpec(
            num_scalar_prefetch=0,
            grid=(num_blocks,),
            in_specs=[
                # scalar alpha on the scalar path (no padded VMEM tile, no DMA)
                pl.BlockSpec(memory_space=pltpu.MemorySpace.SMEM),
                pl.BlockSpec((tr, lane_w), lambda i: (i, 0)),   # x_spatial tile
                pl.BlockSpec((tr, lane_w), lambda i: (i, 0)),   # x_temporal tile
            ],
            out_specs=pl.BlockSpec((tr, lane_w), lambda i: (i, 0)),
        ),
        compiler_params=pltpu.CompilerParams(
            dimension_semantics=("parallel",),
            vmem_limit_bytes=int(vmem_limit),
        ),
    )(alpha, xs2, xt2)

    return out2.reshape(shape)


def _reference_blend(mix_factor, x_spatial, x_temporal, merge_strategy):
    a32 = mix_factor.astype(jnp.float32)[0]
    if merge_strategy in ("learned", "learned_with_images"):
        a32 = jax.nn.sigmoid(a32)
    out_dtype = jnp.promote_types(x_spatial.dtype, x_temporal.dtype)
    a_s = a32.astype(x_spatial.dtype)
    om_s = (1.0 - a32).astype(x_spatial.dtype)
    t1 = (a_s * x_spatial).astype(out_dtype)
    t2 = om_s.astype(out_dtype) * x_temporal.astype(out_dtype)
    return t1 + t2


if __name__ == "__main__":
    key = jax.random.PRNGKey(0)
    k1, k2, k3, k4, k5, k6 = jax.random.split(key, 6)

    # nn.Parameter(torch.Tensor([alpha])) analogue
    mix_factor = jnp.array([0.5], dtype=jnp.float32)

    # Case 1: small NCHW input, default threshold -> fused-XLA fallback path.
    B, C, H, W = 2, 4, 16, 16
    xs_small = jax.random.normal(k1, (B, C, H, W), dtype=jnp.float32)
    xt_small = jax.random.normal(k2, (B, C, H, W), dtype=jnp.float32)
    out_fb = alpha_blender_forward(mix_factor, xs_small, xt_small,
                                   merge_strategy="learned")
    out_fb = jax.block_until_ready(out_fb)
    ref_fb = _reference_blend(mix_factor, xs_small, xt_small, "learned")
    assert out_fb.shape == xs_small.shape and out_fb.dtype == xs_small.dtype
    assert jnp.allclose(out_fb, ref_fb, atol=1e-6, rtol=1e-6)

    # Case 2: same small input forced through the Pallas kernel.
    out_pl = alpha_blender_forward(mix_factor, xs_small, xt_small,
                                   merge_strategy="learned",
                                   min_pallas_elements=0)
    out_pl = jax.block_until_ready(out_pl)
    assert out_pl.shape == xs_small.shape and out_pl.dtype == xs_small.dtype
    assert jnp.allclose(out_pl, ref_fb, atol=1e-6, rtol=1e-6)

    # Case 3: larger input exercising a multi-row slab, 'fixed' strategy.
    B2, C2, H2, W2 = 2, 4, 64, 64
    xs_big = jax.random.normal(k3, (B2, C2, H2, W2), dtype=jnp.float32)
    xt_big = jax.random.normal(k4, (B2, C2, H2, W2), dtype=jnp.float32)
    out_big = alpha_blender_forward(mix_factor, xs_big, xt_big,
                                    merge_strategy="fixed",
                                    min_pallas_elements=0)
    out_big = jax.block_until_ready(out_big)
    ref_big = _reference_blend(mix_factor, xs_big, xt_big, "fixed")
    assert out_big.shape == xs_big.shape and out_big.dtype == xs_big.dtype
    assert jnp.allclose(out_big, ref_big, atol=1e-6, rtol=1e-6)

    # Case 4: mixed dtypes (bf16 spatial, f32 temporal) -> f32 output,
    # matching torch type promotion; forced through the Pallas kernel.
    xs_bf = jax.random.normal(k5, (2, 8, 4, 32, 32), dtype=jnp.bfloat16)
    xt_f32 = jax.random.normal(k6, (2, 8, 4, 32, 32), dtype=jnp.float32)
    out_mix = alpha_blender_forward(mix_factor, xs_bf, xt_f32,
                                    merge_strategy="learned_with_images",
                                    min_pallas_elements=0)
    out_mix = jax.block_until_ready(out_mix)
    ref_mix = _reference_blend(mix_factor, xs_bf, xt_f32, "learned_with_images")
    assert out_mix.shape == xs_bf.shape and out_mix.dtype == jnp.float32
    assert jnp.allclose(out_mix.astype(jnp.float32),
                        ref_mix.astype(jnp.float32), atol=1e-2, rtol=1e-2)

    print("KERNEL_OK")
</pallas_src>

<mosaic_0001>
module attributes {stable_mosaic.version = 11 : i64} {
  func.func @_alpha_blend_kernel(%arg0: i32, %arg1: memref<1xf32, #tpu.memory_space<smem>>, %arg2: memref<1x2048xf32, #tpu.memory_space<vmem>>, %arg3: memref<1x2048xf32, #tpu.memory_space<vmem>>, %arg4: memref<1x2048xf32, #tpu.memory_space<vmem>>) attributes {dimension_semantics = [#tpu.dimension_semantics<parallel>], iteration_bounds = array<i64: 1>, scalar_prefetch = 0 : i64, scratch_operands = 0 : i64, tpu.core_type = #tpu.core_type<tc>, window_params = [{transform_indices = @transform_0, window_bounds = array<i64: 1>}, {transform_indices = @transform_1, window_bounds = array<i64: 1, 2048>}, {transform_indices = @transform_2, window_bounds = array<i64: 1, 2048>}, {transform_indices = @transform_3, window_bounds = array<i64: 1, 2048>}]} {
    %c0 = arith.constant 0 : index
    %0 = memref.load %arg1[%c0] : memref<1xf32, #tpu.memory_space<smem>>
    %c0_0 = arith.constant 0 : index
    %c0_1 = arith.constant 0 : index
    %1 = vector.load %arg2[%c0_0, %c0_1] : memref<1x2048xf32, #tpu.memory_space<vmem>>, vector<1x2048xf32>
    %c0_2 = arith.constant 0 : index
    %c0_3 = arith.constant 0 : index
    %2 = vector.load %arg3[%c0_2, %c0_3] : memref<1x2048xf32, #tpu.memory_space<vmem>>, vector<1x2048xf32>
    %cst = arith.constant 1.000000e+00 : f32
    %3 = arith.subf %cst, %0 : f32
    %4 = vector.broadcast %0 : f32 to vector<1x2048xf32>
    %5 = arith.mulf %4, %1 : vector<1x2048xf32>
    %6 = vector.broadcast %3 : f32 to vector<1x2048xf32>
    %7 = arith.mulf %6, %2 : vector<1x2048xf32>
    %8 = arith.addf %5, %7 : vector<1x2048xf32>
    %c0_4 = arith.constant 0 : index
    %c0_5 = arith.constant 0 : index
    %9 = vector.load %arg4[%c0_4, %c0_5] : memref<1x2048xf32, #tpu.memory_space<vmem>>, vector<1x2048xf32>
    tpu.vector_store %arg4[%c0_4, %c0_5], %8 {strides = array<i32>} : memref<1x2048xf32, #tpu.memory_space<vmem>>, vector<1x2048xf32>,
    return
  }
  func.func @transform_0(%arg0: i32) -> i32 {
    %c0_i32 = arith.constant 0 : i32
    %c0_i32_0 = arith.constant 0 : i32
    return %c0_i32 : i32
  }
  func.func @transform_1(%arg0: i32) -> (i32, i32) {
    %c0_i32 = arith.constant 0 : i32
    %c0_i32_0 = arith.constant 0 : i32
    return %arg0, %c0_i32 : i32, i32
  }
  func.func @transform_2(%arg0: i32) -> (i32, i32) {
    %c0_i32 = arith.constant 0 : i32
    %c0_i32_0 = arith.constant 0 : i32
    return %arg0, %c0_i32 : i32, i32
  }
  func.func @transform_3(%arg0: i32) -> (i32, i32) {
    %c0_i32 = arith.constant 0 : i32
    %c0_i32_0 = arith.constant 0 : i32
    return %arg0, %c0_i32 : i32, i32
  }
}

</mosaic_0001>

<bundles_post_ra>
// kernel: tpu_custom_call.1
= control target key start
LH: loop header
LB: loop body
LE: loop exit
PB: predicated region body
PF: predicated region fallthrough
CT: control target
= control target key end

     0   :  { %9 = vsyncpa [#allocation4], 0  ;;  %s212_s0 = inlined_call_operand.<no memory space> [shape: f32[1], index: 0, kind: input, shape index: {}]   ;;  %s213_s1 = inlined_call_operand.hbm [shape: f32[1,2048], index: 1, kind: input, shape index: {}]   ;;  %s214_s2 = inlined_call_operand.hbm [shape: f32[1,2048], index: 2, kind: input, shape index: {}]   ;;  %s215_s3 = inlined_call_operand.hbm [shape: f32[1,2048], index: 3, kind: output, shape index: {}]  }
   0x1   :  { %10 = vsyncpa [#allocation7], 0 }
   0x2   :  { %11 = vsyncpa [#allocation5], 0  ;;  %s147_s12 = smov [#allocation3]   ;;  %s148_s14 = smov [#allocation6]  }
   0x3   :  { %s20_s13 = sshll.u32 %s147_s12, 4  ;;  %s30_s15 = sshll.u32 %s148_s14, 4  ;;  %s21_s13 = int_to_ptr.vmem [resolvable:$true] %s20_s13  ;;  %s31_s15 = int_to_ptr.vmem [resolvable:$true] %s30_s15 }
   0x4   :  { %s75_s18 = scalar_lea.hbm %s213_s1, 256 }
   0x5   :  { %p76_p0 = scmp.ne.s32.totalorder %s213_s1, %s75_s18  ;;  %p79_p1 = scmp.lt.u32.totalorder %s75_s18, %s213_s1 }
   0x7   :  { %p81_p2 = pnand %p79_p1, %p76_p0 }
   0x9   :  { %84 = shalt.err (!%p81_p2)
}
   0xa   :  { %s85_s23 = scalar_lea.vmem %s21_s13, 256  ;;  %p90_p4 = scmp.lt.s32.totalorder %s21_s13, %s21_s13 }
   0xb   :  { %p86_p3 = scmp.ne.s32.totalorder %s21_s13, %s85_s23  ;;  %p91_p5 = scmp.lt.s32.totalorder %s85_s23, %s85_s23 }
   0xd   :  { %p92_p6 = por %p91_p5, %p90_p4 }
   0xf   :  { %p93_p7 = pnand %p92_p6, %p86_p3 }
  0x11   :  { %96 = shalt.err (!%p93_p7)
}
  0x12   :  { %23 = dma.hbm_to_vmem [thread:$0]  %s213_s1, 256, %s21_s13, [#allocation4]  }
  0x13   :  { %s97_s28 = scalar_lea.hbm %s214_s2, 256 }
  0x14   :  { %p98_p8 = scmp.ne.s32.totalorder %s214_s2, %s97_s28  ;;  %p101_p9 = scmp.lt.u32.totalorder %s97_s28, %s214_s2 }
  0x16   :  { %p103_p10 = pnand %p101_p9, %p98_p8 }
  0x18   :  { %106 = shalt.err (!%p103_p10)
}
  0x19   :  { %s107_s6 = scalar_lea.vmem %s31_s15, 256  ;;  %p112_p12 = scmp.lt.s32.totalorder %s31_s15, %s31_s15 }
  0x1a   :  { %p108_p11 = scmp.ne.s32.totalorder %s31_s15, %s107_s6  ;;  %p113_p13 = scmp.lt.s32.totalorder %s107_s6, %s107_s6 }
  0x1c   :  { %p114_p0 = por %p113_p13, %p112_p12 }
  0x1e   :  { %p115_p1 = pnand %p114_p0, %p108_p11 }
  0x20   :  { %118 = shalt.err (!%p115_p1)
}
  0x21   :  { %33 = dma.hbm_to_vmem [thread:$0]  %s214_s2, 256, %s31_s15, [#allocation7]  }
  0x22   :  { %141 = dma.done.wait [#allocation4], 256  }
  0x23   :  { %142 = vsyncadd [#allocation4], 4294967040 }
  0x24   :  { %143 = dma.done.wait [#allocation7], 256  }
  0x25   :  { %144 = vsyncadd [#allocation7], 4294967040  ;;  %s45_s10 = ssub.f32 1.0, %s212_s0  ;;  %v46_v0 = vstv %s212_s0  ;;  %v41_v2 = vld [vmem:[#allocation3] sm:$0xff]  ;;  %v43_v3 = vld [vmem:[#allocation6] sm:$0xff]  ;;  %s149_s2 = smov [#allocation8]  }
  0x26   :  { %v42_v4 = vld [vmem:[#allocation3 + $0x8] sm:$0xff]  ;;  %v47_v5 = vmul.f32 %v46_v0, %v41_v2  ;;  %v44_v7 = vld [vmem:[#allocation6 + $0x8] sm:$0xff]  ;;  %s62_s13 = sshll.u32 %s149_s2, 4  ;;  %s63_s13 = int_to_ptr.vmem [resolvable:$true] %s62_s13 }
  0x27   :  { %v49_v1 = vstv %s45_s10  ;;  %v48_v8 = vmul.f32 %v46_v0, %v42_v4  ;;  %s119_s14 = scalar_lea.vmem %s63_s13, 256  ;;  %p124_p3 = scmp.lt.s32.totalorder %s63_s13, %s63_s13 }
  0x28   :  { %v50_v6 = vmul.f32 %v49_v1, %v43_v3  ;;  %v51_v9 = vmul.f32 %v49_v1, %v44_v7  ;;  %p120_p2 = scmp.ne.s32.totalorder %s63_s13, %s119_s14  ;;  %p125_p4 = scmp.lt.s32.totalorder %s119_s14, %s119_s14 }
  0x2a   :  { %v52_v10 = vadd.f32 %v50_v6, %v47_v5  ;;  %v53_v11 = vadd.f32 %v51_v9, %v48_v8  ;;  %p126_p5 = por %p125_p4, %p124_p3 }
  0x2c   :  { %54 = vst [vmem:[#allocation8] sm:$0xff] %v52_v10  ;;  %55 = vst [vmem:[#allocation8 + $0x8] sm:$0xff] %v53_v11  ;;  %p127_p6 = pnand %p126_p5, %p120_p2 }
  0x2e   :  { %130 = shalt.err (!%p127_p6)
}
  0x2f   :  { %s131_s16 = scalar_lea.hbm %s215_s3, 256 }
  0x30   :  { %p132_p7 = scmp.ne.s32.totalorder %s215_s3, %s131_s16  ;;  %p135_p8 = scmp.lt.u32.totalorder %s131_s16, %s215_s3 }
  0x32   :  { %p137_p9 = pnand %p135_p8, %p132_p7 }
  0x34   :  { %140 = shalt.err (!%p137_p9)
}
  0x35   :  { %65 = dma.vmem_to_hbm [thread:$0]  %s63_s13, 256, %s215_s3, [#allocation5]  }
  0x36   :  { %145 = dma.done.wait [#allocation5], 256  }
  0x37   :  { %146 = vsyncadd [#allocation5], 4294967040 }
  0x38   :  { %69 = vsyncpa [#allocation4], 1 }
  0x39   :  { %70 = vsyncpa [#allocation7], 1 }
  0x3a   :  { %71 = vsyncpa [#allocation5], 1 }

</bundles_post_ra>
